<compile_context>
chip_gen: v7x
topology: tpu7x:2x2x1
jax: 0.10.0
libtpu: 0.0.40
codegen_flags: <defaults>
</compile_context>

<pallas_src>
import functools
import math

import jax
import jax.numpy as jnp
import numpy as np
from jax.experimental import pallas as pl
from jax.experimental.pallas import tpu as pltpu

# ---------------- model hyperparameters (defaults of the torch module) -------
INIT_DIM_QUERY = 16
INIT_DIM_KEY = 16
INIT_DIM_VALUE = 16
FINAL_DIM_VALUE = 32
NUM_HEADS = 2
DIM_SINGL_HEAD = FINAL_DIM_VALUE // NUM_HEADS      # extend_head=False
LN_EPS = 1e-5
NEG_INF = -1e9                                     # matches torch's -1000000000.0


def _layernorm(x, gamma, beta):
    mu = jnp.mean(x, axis=-1, keepdims=True)
    var = jnp.mean((x - mu) ** 2, axis=-1, keepdims=True)
    return (x - mu) * jax.lax.rsqrt(var + LN_EPS) * gamma + beta


def mha_kernel(q_ref, kv_ref, m_ref, w_ref, p_ref, o_ref, *, bt, lq, lk):
    """One grid step processes `bt` batches.

    q_ref : (bt, lq, Dq)        query activations
    kv_ref: (bt, lk, Dk+Dv)     [key | value] lane-packed activations
    m_ref : (B, lk)             full additive mask (1-m)*NEG_INF (grid-invariant)
    w_ref : (Dq+Dk+Dv, 3D)      block-diagonal: [Wq*s, 0, 0; 0, Wk, 0; 0, 0, Wv]
                                with s = 1/sqrt(dh) pre-folded into the Wq block
    p_ref : (2, 3D)             row0 = [bq*s | bk | bv]
                                row1 = [g_att | b_att | g_out | b_out]
    o_ref : (bt, lq, D)
    """
    H, dh, D = NUM_HEADS, DIM_SINGL_HEAD, FINAL_DIM_VALUE
    dq = q_ref.shape[-1]
    dkv = kv_ref.shape[-1]
    n_q, n_k, G = bt * lq, bt * lk, H * bt

    q2 = q_ref[...].reshape(n_q, dq)          # MXU consumes the input dtype directly
    kv2 = kv_ref[...].reshape(n_k, dkv)
    w = w_ref[...]                            # f32
    p = p_ref[...]                            # f32

    # ---- projections: 2 MXU pushes (scale already folded into Wq / bq) ------
    qp = jnp.dot(q2, w[0:dq, 0:D],
                 preferred_element_type=jnp.float32) + p[0:1, 0:D]        # (n_q, D)
    kvp = jnp.dot(kv2, w[dq:dq + dkv, D:3 * D],
                  preferred_element_type=jnp.float32) + p[0:1, D:3 * D]   # (n_k, 2D)

    # ---- head split via static lane slices; group order g = h*bt + b --------
    def to_groups(x, length):                 # (bt*length, H*dh) -> (H*bt, length, dh)
        return jnp.concatenate(
            [x[:, h * dh:(h + 1) * dh].reshape(bt, length, dh) for h in range(H)],
            axis=0)

    qg = to_groups(qp, lq)                    # (G, lq, dh)
    kg = to_groups(kvp[:, 0:D], lk)           # (G, lk, dh)
    vg = to_groups(kvp[:, D:2 * D], lk)       # (G, lk, dh)

    # ---- attention (additive mask precomputed in the wrapper) ---------------
    madd = m_ref[pl.ds(pl.program_id(0) * bt, bt), :]                     # (bt, lk)
    s = jnp.einsum('gqe,gke->gqk', qg, kg, preferred_element_type=jnp.float32)
    s = (s.reshape(H, bt, lq, lk) + madd[None, :, None, :]).reshape(G, lq, lk)
    s = s - jnp.max(s, axis=-1, keepdims=True)
    e = jnp.exp(s)
    # approx reciprocal runs on the EUP slot; ~1e-3 rel error (fine at rtol=2e-2)
    att = e * pl.reciprocal(jnp.sum(e, axis=-1, keepdims=True), approx=True)
    og = jnp.einsum('gqk,gke->gqe', att, vg,
                    preferred_element_type=jnp.float32)                   # (G, lq, dh)

    # ---- per-head LayerNorm (norm_att), gamma/beta shared across heads ------
    g_att, b_att = p[1:2, 0:dh], p[1:2, dh:2 * dh]
    mu = jnp.mean(og, axis=-1, keepdims=True)
    var = jnp.mean((og - mu) ** 2, axis=-1, keepdims=True)
    og = (og - mu) * jax.lax.rsqrt(var + LN_EPS) * g_att + b_att

    # ---- head combine: lane concat back to (n_q, D) -------------------------
    og2 = og.reshape(H, n_q, dh)
    y = jnp.concatenate([og2[h] for h in range(H)], axis=-1)              # (n_q, D)

    # ---- output LayerNorm (norm_out) + tanh ---------------------------------
    g_out, b_out = p[1:2, 2 * dh:2 * dh + D], p[1:2, 2 * dh + D:2 * dh + 2 * D]
    mu = jnp.mean(y, axis=-1, keepdims=True)
    var = jnp.mean((y - mu) ** 2, axis=-1, keepdims=True)
    y = (y - mu) * jax.lax.rsqrt(var + LN_EPS) * g_out + b_out
    o_ref[...] = jnp.tanh(y).astype(o_ref.dtype).reshape(bt, lq, D)


def _choose_bt(B, Lq, Lk, Dq, Dk, Dv, D, vmem_budget_bytes=24 * 1024 * 1024):
    """Batch-tile size.

    Keeps the per-step double-buffered activation footprint
      ~ 2 * bt * (Lq*(Dq+D) + Lk*(Dk+Dv) + Lk) * 4 B
    under ~24 MiB (safe on v7x's smaller VMEM), while guaranteeing >= 2 grid
    steps (>= 8 once B allows) so v7x's second TensorCore gets work and the
    BlockSpec pipeline overlaps DMA with compute.  bt always divides B exactly
    (the index_maps / full-block stores assume exact tiling).
    """
    per_batch = 2 * (Lq * (Dq + D) + Lk * (Dk + Dv) + Lk) * 4
    vmem_cap = max(1, vmem_budget_bytes // per_batch)
    min_steps = 1 if B < 2 else (2 if B < 8 else 8)
    bt = max(1, min(vmem_cap, B // min_steps))
    while B % bt:
        bt -= 1
    return int(bt)


def multi_head_attention_pallas(query, key, value, mask, params):
    B, Lq, Dq = query.shape
    _, Lk, Dk = key.shape
    _, _, Dv = value.shape
    H, dh, D = NUM_HEADS, DIM_SINGL_HEAD, FINAL_DIM_VALUE
    scale = 1.0 / math.sqrt(dh)

    # ---- one block-diagonal weight operand (1/sqrt(dh) folded into Wq) ------
    W = jnp.zeros((Dq + Dk + Dv, 3 * D), jnp.float32)
    W = W.at[0:Dq, 0:D].set(params["wq"].astype(jnp.float32) * scale)
    W = W.at[Dq:Dq + Dk, D:2 * D].set(params["wk"].astype(jnp.float32))
    W = W.at[Dq + Dk:Dq + Dk + Dv, 2 * D:3 * D].set(params["wv"].astype(jnp.float32))

    # ---- biases + LayerNorm params row-packed into one (2, 3D) operand ------
    P = jnp.zeros((2, 3 * D), jnp.float32)
    P = P.at[0, 0:D].set(params["bq"].reshape(D).astype(jnp.float32) * scale)
    P = P.at[0, D:2 * D].set(params["bk"].reshape(D).astype(jnp.float32))
    P = P.at[0, 2 * D:3 * D].set(params["bv"].reshape(D).astype(jnp.float32))
    P = P.at[1, 0:dh].set(params["g_att"].reshape(dh).astype(jnp.float32))
    P = P.at[1, dh:2 * dh].set(params["b_att"].reshape(dh).astype(jnp.float32))
    P = P.at[1, 2 * dh:2 * dh + D].set(params["g_out"].reshape(D).astype(jnp.float32))
    P = P.at[1, 2 * dh + D:2 * dh + 2 * D].set(params["b_out"].reshape(D).astype(jnp.float32))

    # lane-pack key/value (shared Lk) and precompute the additive mask
    kv = jnp.concatenate([key, value], axis=-1)              # (B, Lk, Dk+Dv)
    madd = (1.0 - mask.astype(jnp.float32)) * NEG_INF        # (B, Lk)

    bt = _choose_bt(B, Lq, Lk, Dq, Dk, Dv, D)
    grid = (B // bt,)
    kernel = functools.partial(mha_kernel, bt=bt, lq=Lq, lk=Lk)

    return pl.pallas_call(
        kernel,
        out_shape=jax.ShapeDtypeStruct((B, Lq, D), query.dtype),
        grid=grid,
        in_specs=[
            pl.BlockSpec((bt, Lq, Dq), lambda i: (i, 0, 0)),
            pl.BlockSpec((bt, Lk, Dk + Dv), lambda i: (i, 0, 0)),
            # grid-invariant operands: constant block index -> fetched once
            pl.BlockSpec((B, Lk), lambda i: (0, 0)),
            pl.BlockSpec((Dq + Dk + Dv, 3 * D), lambda i: (0, 0)),
            pl.BlockSpec((2, 3 * D), lambda i: (0, 0)),
        ],
        out_specs=pl.BlockSpec((bt, Lq, D), lambda i: (i, 0, 0)),
        compiler_params=pltpu.CompilerParams(
            dimension_semantics=("parallel",),
            vmem_limit_bytes=32 * 1024 * 1024,
        ),
    )(query, kv, madd, W, P)


def reference_jax(query, key, value, mask, params):
    """Pure-JAX replica of the PyTorch forward for verification."""
    qp = query @ params["wq"] + params["bq"]
    kp = key @ params["wk"] + params["bk"]
    vp = value @ params["wv"] + params["bv"]

    def split_heads(x):  # torch.cat(x.split(d_h, -1), 0)
        return jnp.concatenate(jnp.split(x, NUM_HEADS, axis=-1), axis=0)

    qs, ks, vs = split_heads(qp), split_heads(kp), split_heads(vp)
    em = (1.0 - mask[:, None, :].astype(query.dtype)) * NEG_INF
    am = jnp.concatenate([em] * NUM_HEADS, axis=0)
    score = jnp.einsum("bqd,bkd->bqk", qs, ks) / math.sqrt(DIM_SINGL_HEAD)
    w = jax.nn.softmax(score + am, axis=-1)
    out = jnp.einsum("bqk,bkd->bqd", w, vs)
    out = _layernorm(out, params["g_att"], params["b_att"])
    out = jnp.concatenate(jnp.split(out, NUM_HEADS, axis=0), axis=-1)
    out = _layernorm(out, params["g_out"], params["b_out"])
    return jnp.tanh(out)


if __name__ == "__main__":
    key0 = jax.random.PRNGKey(0)
    keys = jax.random.split(key0, 16)

    B, Lq, Lk = 2, 8, 8

    # Deterministic parameter init (synthetic, torch-Linear-style scaling).
    def init_linear(k, din, dout):
        kw, kb = jax.random.split(k)
        bound = 1.0 / math.sqrt(din)
        w = jax.random.uniform(kw, (din, dout), jnp.float32, -bound, bound)
        b = jax.random.uniform(kb, (1, dout), jnp.float32, -bound, bound)
        return w, b

    wq, bq = init_linear(keys[0], INIT_DIM_QUERY, FINAL_DIM_VALUE)
    wk, bk = init_linear(keys[1], INIT_DIM_KEY, FINAL_DIM_VALUE)
    wv, bv = init_linear(keys[2], INIT_DIM_VALUE, FINAL_DIM_VALUE)
    params = {
        "wq": wq, "bq": bq, "wk": wk, "bk": bk, "wv": wv, "bv": bv,
        "g_att": 1.0 + 0.1 * jax.random.normal(keys[6], (1, DIM_SINGL_HEAD), jnp.float32),
        "b_att": 0.1 * jax.random.normal(keys[7], (1, DIM_SINGL_HEAD), jnp.float32),
        "g_out": 1.0 + 0.1 * jax.random.normal(keys[8], (1, FINAL_DIM_VALUE), jnp.float32),
        "b_out": 0.1 * jax.random.normal(keys[9], (1, FINAL_DIM_VALUE), jnp.float32),
    }

    query = jax.random.normal(keys[3], (B, Lq, INIT_DIM_QUERY), jnp.float32)
    key_t = jax.random.normal(keys[4], (B, Lk, INIT_DIM_KEY), jnp.float32)
    value = jax.random.normal(keys[5], (B, Lk, INIT_DIM_VALUE), jnp.float32)
    # mask: 1 = attend, 0 = masked out (last position of batch 1 masked)
    mask = jnp.ones((B, Lk), jnp.float32).at[1, -1].set(0.0)

    out = multi_head_attention_pallas(query, key_t, value, mask, params)
    out = jax.block_until_ready(out)

    ref = reference_jax(query, key_t, value, mask, params)
    np.testing.assert_allclose(np.asarray(out), np.asarray(ref), rtol=2e-2, atol=2e-2)

    print("KERNEL_OK")
</pallas_src>

<mosaic_0001>
module attributes {stable_mosaic.version = 11 : i64} {
  func.func @mha_kernel(%arg0: i32, %arg1: memref<1x8x16xf32, #tpu.memory_space<vmem>>, %arg2: memref<1x8x32xf32, #tpu.memory_space<vmem>>, %arg3: memref<2x8xf32, #tpu.memory_space<vmem>>, %arg4: memref<48x96xf32, #tpu.memory_space<vmem>>, %arg5: memref<2x96xf32, #tpu.memory_space<vmem>>, %arg6: memref<1x8x32xf32, #tpu.memory_space<vmem>>) attributes {dimension_semantics = [#tpu.dimension_semantics<parallel>], iteration_bounds = array<i64: 2>, scalar_prefetch = 0 : i64, scratch_operands = 0 : i64, tpu.core_type = #tpu.core_type<tc>, window_params = [{transform_indices = @transform_0, window_bounds = array<i64: 1, 8, 16>}, {transform_indices = @transform_1, window_bounds = array<i64: 1, 8, 32>}, {pipeline_mode = #tpu.pipeline_mode<synchronous>, transform_indices = @transform_2, window_bounds = array<i64: 2, 8>}, {pipeline_mode = #tpu.pipeline_mode<synchronous>, transform_indices = @transform_3, window_bounds = array<i64: 48, 96>}, {pipeline_mode = #tpu.pipeline_mode<synchronous>, transform_indices = @transform_4, window_bounds = array<i64: 2, 96>}, {transform_indices = @transform_5, window_bounds = array<i64: 1, 8, 32>}]} {
    %c0 = arith.constant 0 : index
    %c0_0 = arith.constant 0 : index
    %c0_1 = arith.constant 0 : index
    %0 = vector.load %arg1[%c0, %c0_0, %c0_1] : memref<1x8x16xf32, #tpu.memory_space<vmem>>, vector<1x8x16xf32>
    %1 = vector.shape_cast %0 : vector<1x8x16xf32> to vector<8x16xf32>
    %c0_2 = arith.constant 0 : index
    %c0_3 = arith.constant 0 : index
    %c0_4 = arith.constant 0 : index
    %2 = vector.load %arg2[%c0_2, %c0_3, %c0_4] : memref<1x8x32xf32, #tpu.memory_space<vmem>>, vector<1x8x32xf32>
    %3 = vector.shape_cast %2 : vector<1x8x32xf32> to vector<8x32xf32>
    %c0_5 = arith.constant 0 : index
    %c0_6 = arith.constant 0 : index
    %4 = vector.load %arg4[%c0_5, %c0_6] : memref<48x96xf32, #tpu.memory_space<vmem>>, vector<48x96xf32>
    %c0_7 = arith.constant 0 : index
    %c0_8 = arith.constant 0 : index
    %5 = vector.load %arg5[%c0_7, %c0_8] : memref<2x96xf32, #tpu.memory_space<vmem>>, vector<2x96xf32>
    %6 = vector.extract_strided_slice %4 {offsets = [0, 0], sizes = [16, 32], strides = [1, 1]} : vector<48x96xf32> to vector<16x32xf32>
    %cst = arith.constant dense<0.000000e+00> : vector<8x32xf32>
    %7 = tpu.matmul %1, %6, %cst {dimension_numbers = #tpu.dot_dimension_numbers<[1], [0], [0], [1], [0, 0, 1, 1], [], []>} : vector<8x16xf32>, vector<16x32xf32>, vector<8x32xf32> -> vector<8x32xf32>
    %8 = vector.extract_strided_slice %5 {offsets = [0, 0], sizes = [1, 32], strides = [1, 1]} : vector<2x96xf32> to vector<1x32xf32>
    %9 = vector.broadcast %8 : vector<1x32xf32> to vector<8x32xf32>
    %10 = arith.addf %7, %9 : vector<8x32xf32>
    %11 = vector.extract_strided_slice %4 {offsets = [16, 32], sizes = [32, 64], strides = [1, 1]} : vector<48x96xf32> to vector<32x64xf32>
    %cst_9 = arith.constant dense<0.000000e+00> : vector<8x64xf32>
    %12 = tpu.matmul %3, %11, %cst_9 {dimension_numbers = #tpu.dot_dimension_numbers<[1], [0], [0], [1], [0, 0, 1, 1], [], []>} : vector<8x32xf32>, vector<32x64xf32>, vector<8x64xf32> -> vector<8x64xf32>
    %13 = vector.extract_strided_slice %5 {offsets = [0, 32], sizes = [1, 64], strides = [1, 1]} : vector<2x96xf32> to vector<1x64xf32>
    %14 = vector.broadcast %13 : vector<1x64xf32> to vector<8x64xf32>
    %15 = arith.addf %12, %14 : vector<8x64xf32>
    %16 = vector.extract_strided_slice %10 {offsets = [0, 0], sizes = [8, 16], strides = [1, 1]} : vector<8x32xf32> to vector<8x16xf32>
    %17 = vector.shape_cast %16 : vector<8x16xf32> to vector<1x8x16xf32>
    %18 = vector.extract_strided_slice %10 {offsets = [0, 16], sizes = [8, 16], strides = [1, 1]} : vector<8x32xf32> to vector<8x16xf32>
    %19 = vector.shape_cast %18 : vector<8x16xf32> to vector<1x8x16xf32>
    %20 = tpu.concatenate %17, %19 in 0 : vector<1x8x16xf32>, vector<1x8x16xf32> -> vector<2x8x16xf32>
    %21 = vector.extract_strided_slice %15 {offsets = [0, 0], sizes = [8, 32], strides = [1, 1]} : vector<8x64xf32> to vector<8x32xf32>
    %22 = vector.extract_strided_slice %21 {offsets = [0, 0], sizes = [8, 16], strides = [1, 1]} : vector<8x32xf32> to vector<8x16xf32>
    %23 = vector.shape_cast %22 : vector<8x16xf32> to vector<1x8x16xf32>
    %24 = vector.extract_strided_slice %21 {offsets = [0, 16], sizes = [8, 16], strides = [1, 1]} : vector<8x32xf32> to vector<8x16xf32>
    %25 = vector.shape_cast %24 : vector<8x16xf32> to vector<1x8x16xf32>
    %26 = tpu.concatenate %23, %25 in 0 : vector<1x8x16xf32>, vector<1x8x16xf32> -> vector<2x8x16xf32>
    %27 = vector.extract_strided_slice %15 {offsets = [0, 32], sizes = [8, 32], strides = [1, 1]} : vector<8x64xf32> to vector<8x32xf32>
    %28 = vector.extract_strided_slice %27 {offsets = [0, 0], sizes = [8, 16], strides = [1, 1]} : vector<8x32xf32> to vector<8x16xf32>
    %29 = vector.shape_cast %28 : vector<8x16xf32> to vector<1x8x16xf32>
    %30 = vector.extract_strided_slice %27 {offsets = [0, 16], sizes = [8, 16], strides = [1, 1]} : vector<8x32xf32> to vector<8x16xf32>
    %31 = vector.shape_cast %30 : vector<8x16xf32> to vector<1x8x16xf32>
    %32 = tpu.concatenate %29, %31 in 0 : vector<1x8x16xf32>, vector<1x8x16xf32> -> vector<2x8x16xf32>
    %c1_i32 = arith.constant 1 : i32
    %33 = arith.muli %arg0, %c1_i32 : i32
    %34 = arith.index_cast %33 : i32 to index
    %c0_10 = arith.constant 0 : index
    %35 = vector.load %arg3[%34, %c0_10] : memref<2x8xf32, #tpu.memory_space<vmem>>, vector<1x8xf32>
    "tpu.trace_start"() <{level = 10 : i32, message = "gqe,gke->gqk"}> : () -> ()
    %cst_11 = arith.constant dense<0.000000e+00> : vector<2x8x8xf32>
    %36 = tpu.matmul %20, %26, %cst_11 {dimension_numbers = #tpu.dot_dimension_numbers<[2], [2], [1], [1], [0, 0, 0, 1, 1, 1], [0], [0]>} : vector<2x8x16xf32>, vector<2x8x16xf32>, vector<2x8x8xf32> -> vector<2x8x8xf32>
    "tpu.trace_stop"() : () -> ()
    %37 = vector.shape_cast %36 : vector<2x8x8xf32> to vector<2x1x8x8xf32>
    %38 = vector.shape_cast %35 : vector<1x8xf32> to vector<1x1x1x8xf32>
    %39 = vector.broadcast %38 : vector<1x1x1x8xf32> to vector<2x1x8x8xf32>
    %40 = arith.addf %37, %39 : vector<2x1x8x8xf32>
    %41 = vector.shape_cast %40 : vector<2x1x8x8xf32> to vector<2x8x8xf32>
    %cst_12 = arith.constant dense<0xFF800000> : vector<2x8xf32>
    %42 = vector.multi_reduction <maximumf>, %41, %cst_12 [2] : vector<2x8x8xf32> to vector<2x8xf32>
    %43 = vector.shape_cast %42 : vector<2x8xf32> to vector<2x8x1xf32>
    %44 = vector.broadcast %43 : vector<2x8x1xf32> to vector<2x8x8xf32>
    %45 = arith.subf %41, %44 : vector<2x8x8xf32>
    %46 = math.exp %45 : vector<2x8x8xf32>
    %cst_13 = arith.constant dense<0.000000e+00> : vector<2x8xf32>
    %47 = vector.multi_reduction <add>, %46, %cst_13 [2] : vector<2x8x8xf32> to vector<2x8xf32>
    %48 = vector.shape_cast %47 : vector<2x8xf32> to vector<2x8x1xf32>
    %49 = tpu.reciprocal %48 {approx = true} : vector<2x8x1xf32> -> vector<2x8x1xf32>
    %50 = vector.broadcast %49 : vector<2x8x1xf32> to vector<2x8x8xf32>
    %51 = arith.mulf %46, %50 : vector<2x8x8xf32>
    "tpu.trace_start"() <{level = 10 : i32, message = "gqk,gke->gqe"}> : () -> ()
    %cst_14 = arith.constant dense<0.000000e+00> : vector<2x8x16xf32>
    %52 = tpu.matmul %51, %32, %cst_14 {dimension_numbers = #tpu.dot_dimension_numbers<[2], [1], [1], [2], [0, 0, 0, 1, 1, 2], [0], [0]>} : vector<2x8x8xf32>, vector<2x8x16xf32>, vector<2x8x16xf32> -> vector<2x8x16xf32>
    "tpu.trace_stop"() : () -> ()
    %53 = vector.extract_strided_slice %5 {offsets = [1, 0], sizes = [1, 16], strides = [1, 1]} : vector<2x96xf32> to vector<1x16xf32>
    %54 = vector.extract_strided_slice %5 {offsets = [1, 16], sizes = [1, 16], strides = [1, 1]} : vector<2x96xf32> to vector<1x16xf32>
    %cst_15 = arith.constant dense<0.000000e+00> : vector<2x8xf32>
    %55 = vector.multi_reduction <add>, %52, %cst_15 [2] : vector<2x8x16xf32> to vector<2x8xf32>
    %56 = vector.shape_cast %55 : vector<2x8xf32> to vector<2x8x1xf32>
    %cst_16 = arith.constant 1.600000e+01 : f32
    %57 = vector.broadcast %cst_16 : f32 to vector<2x8x1xf32>
    %58 = arith.divf %56, %57 : vector<2x8x1xf32>
    %59 = vector.broadcast %58 : vector<2x8x1xf32> to vector<2x8x16xf32>
    %60 = arith.subf %52, %59 : vector<2x8x16xf32>
    %61 = arith.mulf %60, %60 : vector<2x8x16xf32>
    %cst_17 = arith.constant dense<0.000000e+00> : vector<2x8xf32>
    %62 = vector.multi_reduction <add>, %61, %cst_17 [2] : vector<2x8x16xf32> to vector<2x8xf32>
    %63 = vector.shape_cast %62 : vector<2x8xf32> to vector<2x8x1xf32>
    %cst_18 = arith.constant 1.600000e+01 : f32
    %64 = vector.broadcast %cst_18 : f32 to vector<2x8x1xf32>
    %65 = arith.divf %63, %64 : vector<2x8x1xf32>
    %66 = vector.broadcast %58 : vector<2x8x1xf32> to vector<2x8x16xf32>
    %67 = arith.subf %52, %66 : vector<2x8x16xf32>
    %cst_19 = arith.constant 9.99999974E-6 : f32
    %68 = vector.broadcast %cst_19 : f32 to vector<2x8x1xf32>
    %69 = arith.addf %65, %68 : vector<2x8x1xf32>
    %70 = math.rsqrt %69 : vector<2x8x1xf32>
    %71 = vector.broadcast %70 : vector<2x8x1xf32> to vector<2x8x16xf32>
    %72 = arith.mulf %67, %71 : vector<2x8x16xf32>
    %73 = vector.shape_cast %53 : vector<1x16xf32> to vector<1x1x16xf32>
    %74 = vector.broadcast %73 : vector<1x1x16xf32> to vector<2x8x16xf32>
    %75 = arith.mulf %72, %74 : vector<2x8x16xf32>
    %76 = vector.shape_cast %54 : vector<1x16xf32> to vector<1x1x16xf32>
    %77 = vector.broadcast %76 : vector<1x1x16xf32> to vector<2x8x16xf32>
    %78 = arith.addf %75, %77 : vector<2x8x16xf32>
    %79 = vector.extract_strided_slice %78 {offsets = [0, 0, 0], sizes = [1, 8, 16], strides = [1, 1, 1]} : vector<2x8x16xf32> to vector<1x8x16xf32>
    %80 = vector.shape_cast %79 : vector<1x8x16xf32> to vector<8x16xf32>
    %81 = vector.extract_strided_slice %78 {offsets = [1, 0, 0], sizes = [1, 8, 16], strides = [1, 1, 1]} : vector<2x8x16xf32> to vector<1x8x16xf32>
    %82 = vector.shape_cast %81 : vector<1x8x16xf32> to vector<8x16xf32>
    %83 = tpu.concatenate %80, %82 in 1 : vector<8x16xf32>, vector<8x16xf32> -> vector<8x32xf32>
    %84 = vector.extract_strided_slice %5 {offsets = [1, 32], sizes = [1, 32], strides = [1, 1]} : vector<2x96xf32> to vector<1x32xf32>
    %85 = vector.extract_strided_slice %5 {offsets = [1, 64], sizes = [1, 32], strides = [1, 1]} : vector<2x96xf32> to vector<1x32xf32>
    %cst_20 = arith.constant dense<0.000000e+00> : vector<8xf32>
    %86 = vector.multi_reduction <add>, %83, %cst_20 [1] : vector<8x32xf32> to vector<8xf32>
    %87 = vector.shape_cast %86 : vector<8xf32> to vector<8x1xf32>
    %cst_21 = arith.constant 3.200000e+01 : f32
    %88 = vector.broadcast %cst_21 : f32 to vector<8x1xf32>
    %89 = arith.divf %87, %88 : vector<8x1xf32>
    %90 = vector.broadcast %89 : vector<8x1xf32> to vector<8x32xf32>
    %91 = arith.subf %83, %90 : vector<8x32xf32>
    %92 = arith.mulf %91, %91 : vector<8x32xf32>
    %cst_22 = arith.constant dense<0.000000e+00> : vector<8xf32>
    %93 = vector.multi_reduction <add>, %92, %cst_22 [1] : vector<8x32xf32> to vector<8xf32>
    %94 = vector.shape_cast %93 : vector<8xf32> to vector<8x1xf32>
    %cst_23 = arith.constant 3.200000e+01 : f32
    %95 = vector.broadcast %cst_23 : f32 to vector<8x1xf32>
    %96 = arith.divf %94, %95 : vector<8x1xf32>
    %97 = vector.broadcast %89 : vector<8x1xf32> to vector<8x32xf32>
    %98 = arith.subf %83, %97 : vector<8x32xf32>
    %cst_24 = arith.constant 9.99999974E-6 : f32
    %99 = vector.broadcast %cst_24 : f32 to vector<8x1xf32>
    %100 = arith.addf %96, %99 : vector<8x1xf32>
    %101 = math.rsqrt %100 : vector<8x1xf32>
    %102 = vector.broadcast %101 : vector<8x1xf32> to vector<8x32xf32>
    %103 = arith.mulf %98, %102 : vector<8x32xf32>
    %104 = vector.broadcast %84 : vector<1x32xf32> to vector<8x32xf32>
    %105 = arith.mulf %103, %104 : vector<8x32xf32>
    %106 = vector.broadcast %85 : vector<1x32xf32> to vector<8x32xf32>
    %107 = arith.addf %105, %106 : vector<8x32xf32>
    %108 = math.tanh %107 : vector<8x32xf32>
    %109 = vector.shape_cast %108 : vector<8x32xf32> to vector<1x8x32xf32>
    %c0_25 = arith.constant 0 : index
    %c0_26 = arith.constant 0 : index
    %c0_27 = arith.constant 0 : index
    %110 = vector.load %arg6[%c0_25, %c0_26, %c0_27] : memref<1x8x32xf32, #tpu.memory_space<vmem>>, vector<1x8x32xf32>
    tpu.vector_store %arg6[%c0_25, %c0_26, %c0_27], %109 {strides = array<i32>} : memref<1x8x32xf32, #tpu.memory_space<vmem>>, vector<1x8x32xf32>,
    return
  }
  func.func @transform_0(%arg0: i32) -> (i32, i32, i32) {
    %c0_i32 = arith.constant 0 : i32
    %c0_i32_0 = arith.constant 0 : i32
    %c0_i32_1 = arith.constant 0 : i32
    return %arg0, %c0_i32, %c0_i32_0 : i32, i32, i32
  }
  func.func @transform_1(%arg0: i32) -> (i32, i32, i32) {
    %c0_i32 = arith.constant 0 : i32
    %c0_i32_0 = arith.constant 0 : i32
    %c0_i32_1 = arith.constant 0 : i32
    return %arg0, %c0_i32, %c0_i32_0 : i32, i32, i32
  }
  func.func @transform_2(%arg0: i32) -> (i32, i32) {
    %c0_i32 = arith.constant 0 : i32
    %c0_i32_0 = arith.constant 0 : i32
    %c0_i32_1 = arith.constant 0 : i32
    return %c0_i32, %c0_i32_0 : i32, i32
  }
  func.func @transform_3(%arg0: i32) -> (i32, i32) {
    %c0_i32 = arith.constant 0 : i32
    %c0_i32_0 = arith.constant 0 : i32
    %c0_i32_1 = arith.constant 0 : i32
    return %c0_i32, %c0_i32_0 : i32, i32
  }
  func.func @transform_4(%arg0: i32) -> (i32, i32) {
    %c0_i32 = arith.constant 0 : i32
    %c0_i32_0 = arith.constant 0 : i32
    %c0_i32_1 = arith.constant 0 : i32
    return %c0_i32, %c0_i32_0 : i32, i32
  }
  func.func @transform_5(%arg0: i32) -> (i32, i32, i32) {
    %c0_i32 = arith.constant 0 : i32
    %c0_i32_0 = arith.constant 0 : i32
    %c0_i32_1 = arith.constant 0 : i32
    return %arg0, %c0_i32, %c0_i32_0 : i32, i32, i32
  }
}

</mosaic_0001>

<bundles_post_ra>
// kernel: tpu_custom_call.1
= control target key start
LH: loop header
LB: loop body
LE: loop exit
PB: predicated region body
PF: predicated region fallthrough
CT: control target
= control target key end

     0   :  { %s1685_s0 = inlined_call_operand.hbm [shape: f32[2,8,16], index: 0, kind: input, shape index: {}]   ;;  %s1686_s1 = inlined_call_operand.hbm [shape: f32[2,8,32], index: 1, kind: input, shape index: {}]   ;;  %s1687_s2 = inlined_call_operand.vmem [shape: f32[2,8], index: 2, kind: input, shape index: {}]   ;;  %s1688_s3 = inlined_call_operand.hbm [shape: f32[48,96], index: 3, kind: input, shape index: {}]   ;;  %s1689_s4 = inlined_call_operand.vmem [shape: f32[2,96], index: 4, kind: input, shape index: {}]   ;;  %s1690_s5 = inlined_call_operand.hbm [shape: f32[2,8,32], index: 5, kind: output, shape index: {}]  }
   0x1   :  { %1695 = sst [smem:[#allocation14_spill]] %s1688_s3 }
   0x2   :  { %10 = vsyncpa [#allocation3], 0 }
   0x3   :  { %12 = vsyncpa [#allocation3 + $0x1], 0 }
   0x4   :  { %13 = vsyncpa [#allocation6], 0 }
   0x5   :  { %15 = vsyncpa [#allocation6 + $0x1], 0 }
   0x6   :  { %16 = vsyncpa [#allocation4], 0 }
   0x7   :  { %18 = vsyncpa [#allocation4 + $0x1], 0  ;;  %s1387_s18 = smov 0   ;;  %s1389_s19 = smov 0  }
   0x8   :  { %s1391_s20 = smov 0   ;;  %s1393_s21 = smov 0  }
   0x9 LB: > { %s1408_s22 = sadd.s32 4294967295, %s1342_s21   ;;  %s994_s23 = sadd.s32 4294967294, %s1342_s21   ;;  %s1342_s21 = sphi %s1393_s21, %s1716_s21   ;;  %s1338_s20 = sphi %s1391_s20, %s1715_s20   ;;  %s1334_s19 = sphi %s1389_s19, %s1714_s19   ;;  %s1330_s18 = sphi %s1387_s18, %s1713_s18  }
   0xa   : > { %p44_p0 = scmp.ne.s32.totalorder %s1334_s19, %s1330_s18  ;;  %p1691_p1 = scmp.eq.s32.totalorder %s1408_s22, 0 }
   0xb   : > { %p163_p3 = scmp.eq.s32.totalorder %s994_s23, 1  ;;  %p995_p5 = scmp.ge.s32.totalorder %s1342_s21, 1 }
   0xc   : > { %p1417_p4 = por %p1691_p1, %p44_p0  ;;  %p170_p7 = scmp.lt.s32.totalorder %s1342_s21, 3 }
   0xd   : > { %p1422_p6 = por %p163_p3, %p44_p0  ;;  %s1344_s27 = smov [#allocation7]  }
   0xe   : > { %s1696_s24 = scalar_select %p1417_p4, 1, 0 }
   0xf   : > { %s1697_s25 = scalar_select %p1422_p6, 1, 0 }
  0x10   : > { %p1427_p8 = pnand %p995_p5, %p170_p7  ;;  %s185_s28 = sshll.u32 %s1344_s27, 4  ;;  %s1431_s28 = int_to_ptr.vmem [resolvable:$true] %s185_s28 }
  0x11   : > { %s1443_s30 = sadd.s32 1, %s1342_s21   ;;  %s31_s6 = sadd.s32 1, %s1338_s20 }
  0x12   : > { %s1698_s26 = scalar_select %p1427_p8, 1, 0 }
  0x13   : > { %p1093_p9 = pneg %p1427_p8  ;;  %s28_s7 = ssub.s32 %s1342_s21, %s1443_s30 }
  0x14   : > { %s1700_s3 = sld [smem:[#allocation14_spill]] }
  0x15   : > { %p1438_p11 = pnand %p1093_p9, %p1691_p1 }
  0x17   : > { %p1182_p13 = pneg %p1438_p11 }
  0x1a   : > { %s1180_s10 = scalar_lea.hbm %s1700_s3, 768 }
  0x1b   : > { %p1181_p12 = scmp.ne.s32.totalorder %s1700_s3, %s1180_s10  ;;  %p1187_p5 = scmp.lt.u32.totalorder %s1180_s10, %s1700_s3 }
  0x1d   : > { %p1183_p0 = pnand %p1182_p13, %p1181_p12 }
  0x1f   : > { %p1184_p3 = pneg %p1183_p0 }
  0x21   : > { %p1189_p7 = pnand %p1187_p5, %p1184_p3 }
  0x23   : > { %1192 = shalt.err (!%p1189_p7)
}
  0x24   : > { %s1193_s15 = scalar_lea.vmem %s1431_s28, 768  ;;  %p1201_p2 = scmp.lt.s32.totalorder %s1431_s28, %s1431_s28 }
  0x25   : > { %p1194_p9 = scmp.ne.s32.totalorder %s1431_s28, %s1193_s15  ;;  %p1202_p6 = scmp.lt.s32.totalorder %s1193_s15, %s1193_s15 }
  0x27   : > { %p1196_p10 = pnand %p1194_p9, %p1182_p13  ;;  %p1203_p4 = por %p1202_p6, %p1201_p2 }
  0x29   : > { %p1197_p1 = pneg %p1196_p10 }
  0x2b   : > { %p1204_p8 = pnand %p1203_p4, %p1197_p1 }
  0x2d   : > { %1207 = shalt.err (!%p1204_p8)
}
  0x2e   : > { %s1345_s16 = smov 128   ;;  %s1346_s17 = smov 8  }
  0x2f   : > { %1096 = dma.hbm_to_vmem [thread:$0]  (!%p1438_p11), %s1700_s3, 768, %s1431_s28, [#allocation6], %s1345_s16, %s1345_s16, %s1346_s17  }
  0x30   : > { %p29_p2 = scmp.eq.s32.totalorder %s28_s7, 0  ;;  %p38_p1 = scmp.ne.s32.totalorder %s1338_s20, %s1334_s19 }
  0x31   : > { %p39_p4 = scmp.eq.s32.totalorder %s1342_s21, 0  ;;  %p1109_p6 = scmp.lt.s32.totalorder %s1342_s21, 2 }
  0x32   : > { %s1474_s8 = scalar_select %p29_p2, %s1338_s20, %s31_s6  }
  0x33   : > { %p40_p8 = por %p39_p4, %p38_p1  ;;  %p1702_p10 = scmp.eq.s32.totalorder %s1408_s22, 1 }
  0x34   : > { %1701 = sst [smem:[#allocation13_spill]] %s1474_s8  ;;  %s202_s10 = sand.u32 1, %s1338_s20  }
  0x35   : > { %p1478_p12 = por %p1702_p10, %p38_p1  ;;  %s999_s11 = sshll.u32 %s1342_s21, 7 }
  0x36   : > { %s1484_s12 = sshll.u32 %s202_s10, 3  ;;  %s1489_s28 = scalar_lea.hbm %s1685_s0, %s999_s11 }
  0x37   : > { %s1703_s9 = scalar_select %p1478_p12, 1, 0 }
  0x38   : > { %s206_s6 = scalar_lea.vmem [#allocation2], %s1484_s12  ;;  %p1492_p11 = pnand %p1109_p6, %p40_p8 }
  0x39   : > { %s213_s7 = sshll.u32 %s206_s6, 4  ;;  %s1501_s17 = scalar_lea.hbm %s1686_s1, %s999_s11  ;;  %s1496_s7 = int_to_ptr.vmem [resolvable:$true] %s213_s7 }
  0x3a   : > { %s203_s23 = scalar_lea.sflag [#allocation3], %s202_s10  ;;  %s1208_s27 = scalar_lea.hbm %s1489_s28, 128 }
  0x3b   : > { %p1209_p13 = scmp.ne.s32.totalorder %s1489_s28, %s1208_s27  ;;  %p1210_p0 = pneg %p1492_p11 }
  0x3c   : > { %s1213_s6 = scalar_lea.hbm %s1685_s0, 256  ;;  %p1214_p7 = scmp.lt.u32.totalorder %s1489_s28, %s1685_s0 }
  0x3d   : > { %p1211_p3 = pnand %p1210_p0, %p1209_p13  ;;  %p1215_p9 = scmp.lt.u32.totalorder %s1213_s6, %s1208_s27 }
  0x3e   : > { %p1217_p1 = scmp.lt.u32.totalorder %s1208_s27, %s1489_s28 }
  0x3f   : > { %p1212_p5 = pneg %p1211_p3  ;;  %p1216_p2 = por %p1215_p9, %p1214_p7 }
  0x41   : > { %p1218_p4 = por %p1217_p1, %p1216_p2 }
  0x43   : > { %p1219_p6 = pnand %p1218_p4, %p1212_p5 }
  0x45   : > { %1222 = shalt.err (!%p1219_p6)
}
  0x46   : > { %s1223_s10 = scalar_lea.vmem %s1496_s7, 128  ;;  %s1347_s11 = smov [#allocation2]  }
  0x47   : > { %p1224_p8 = scmp.ne.s32.totalorder %s1496_s7, %s1223_s10  ;;  %s1228_s15 = sshll.u32 %s1347_s11, 4  ;;  %s1229_s15 = int_to_ptr.vmem [resolvable:$false] %s1228_s15 }
  0x48   : > { %s1230_s3 = scalar_lea.vmem %s1229_s15, 256  ;;  %p1231_p3 = scmp.lt.s32.totalorder %s1496_s7, %s1229_s15 }
  0x49   : > { %p1226_p10 = pnand %p1224_p8, %p1210_p0  ;;  %p1232_p7 = scmp.lt.s32.totalorder %s1230_s3, %s1223_s10 }
  0x4b   : > { %p1227_p13 = pneg %p1226_p10  ;;  %p1233_p9 = por %p1232_p7, %p1231_p3 }
  0x4d   : > { %p1234_p2 = pnand %p1233_p9, %p1227_p13 }
  0x4f   : > { %1237 = shalt.err (!%p1234_p2)
}
  0x50   : > { %1100 = dma.hbm_to_vmem [thread:$0]  (!%p1492_p11), %s1489_s28, 128, %s1496_s7, %s203_s23  }
  0x51   : > { %s220_s8 = sand.u32 1, %s1342_s21   ;;  %s224_s16 = scalar_lea.vmem [#allocation5], %s1484_s12 }
  0x52   : > { %s231_s27 = sshll.u32 %s224_s16, 4  ;;  %s221_s29 = scalar_lea.sflag [#allocation6], %s220_s8  ;;  %s232_s27 = int_to_ptr.vmem [resolvable:$true] %s231_s27 }
  0x53   : > { %s1238_s13 = scalar_lea.hbm %s1501_s17, 128  ;;  %s1243_s11 = scalar_lea.hbm %s1686_s1, 256 }
  0x54   : > { %p1239_p5 = scmp.ne.s32.totalorder %s1501_s17, %s1238_s13  ;;  %p1244_p6 = scmp.lt.u32.totalorder %s1501_s17, %s1686_s1 }
  0x55   : > { %p1245_p8 = scmp.lt.u32.totalorder %s1243_s11, %s1238_s13  ;;  %p1247_p13 = scmp.lt.u32.totalorder %s1238_s13, %s1501_s17 }
  0x56   : > { %p1241_p1 = pnand %p1239_p5, %p1210_p0 }
  0x57   : > { %p1246_p10 = por %p1245_p8, %p1244_p6 }
  0x58   : > { %p1242_p4 = pneg %p1241_p1 }
  0x59   : > { %p1248_p3 = por %p1247_p13, %p1246_p10 }
  0x5b   : > { %p1249_p7 = pnand %p1248_p3, %p1242_p4 }
  0x5d   : > { %1252 = shalt.err (!%p1249_p7)
}
  0x5e   : > { %s1253_s12 = scalar_lea.vmem %s232_s27, 128  ;;  %s1348_s28 = smov [#allocation5]  }
  0x5f   : > { %p1254_p9 = scmp.ne.s32.totalorder %s232_s27, %s1253_s12  ;;  %s1258_s7 = sshll.u32 %s1348_s28, 4  ;;  %s1259_s7 = int_to_ptr.vmem [resolvable:$false] %s1258_s7 }
  0x60   : > { %s1260_s23 = scalar_lea.vmem %s1259_s7, 256  ;;  %p1261_p1 = scmp.lt.s32.totalorder %s232_s27, %s1259_s7 }
  0x61   : > { %p1256_p2 = pnand %p1254_p9, %p1210_p0  ;;  %p1262_p12 = scmp.lt.s32.totalorder %s1260_s23, %s1253_s12 }
  0x63   : > { %p1257_p5 = pneg %p1256_p2  ;;  %p1263_p6 = por %p1262_p12, %p1261_p1 }
  0x65   : > { %p1264_p8 = pnand %p1263_p6, %p1257_p5 }
  0x67   : > { %1267 = shalt.err (!%p1264_p8)
}
  0x68   : > { %1103 = dma.hbm_to_vmem [thread:$0]  (!%p1492_p11), %s1501_s17, 128, %s232_s27, %s221_s29  }
  0x69   : > { %p1705_p4 = scmp.ne.s32.totalorder %s1698_s26, 0 }
  0x6a   : > { %s1552_s8 = sand.u32 (!%p1705_p4), 1, %s1334_s19   ;;  %p1706_p12 = scmp.ne.s32.totalorder (!%p1705_p4), %s1696_s24, 0 }
  0x6b   : > { %240 = sbr.rel (%p1705_p4) target bundleno = 2089 (0x829), region = 40  ;;  %s1555_s16 = sshll.u32 (!%p1705_p4), %s1552_s8, 3 }
  0x6c   : > { %s243_s13 = scalar_lea.sflag (!%p1705_p4), [#allocation3], %s1552_s8  ;;  %s246_s6 = scalar_lea.vmem (!%p1705_p4), [#allocation2], %s1555_s16 }
  0x72   : > { %1313 = dma.done.wait (%p1706_p12), %s243_s13, 128  }
  0x73   : > { %1315 = vsyncadd (%p1706_p12), %s243_s13, 4294967168  ;;  %s251_s26 = sand.u32 1, %s1408_s22   ;;  %s255_s17 = scalar_lea.vmem [#allocation5], %s1555_s16 }
  0x74   : > { %s252_s14 = scalar_lea.sflag [#allocation6], %s251_s26 }
  0x75   : > { %1317 = dma.done.wait (%p1706_p12), %s252_s14, 128  }
  0x76   : > { %1319 = vsyncadd (%p1706_p12), %s252_s14, 4294967168  ;;  %p1707_p11 = scmp.eq.s32.totalorder %s1408_s22, 0 }
  0x78   : > { %1321 = dma.done.wait (%p1707_p11), [#allocation6], 768   ;;  %p1708_p0 = pmov %p1707_p11 }
  0x79   : > { %v1349_v0 = vmov 0.0|0.0   ;;  %vm1350_vm0 = vmmov 0   ;;  %v1351_v1 = vmov 0.0   ;;  %v295_v2 = vld [vmem:[#allocation7 + $0x10] sm:$0xff]  ;;  %v296_v3 = vld [vmem:[#allocation7 + $0x18] sm:$0xff]  ;;  %v297_v4 = vld [vmem:[#allocation7 + $0x20] sm:$0xff]  ;;  %v300_v9 = vlaneseq  ;;  %s478_s3 = scalar_lea.vmem %s1687_s2, %s1408_s22 }
  0x7a   : > { %1323 = vsyncadd (%p1708_p0), [#allocation6], 4294966528  ;;  %1077 = vmatprep.subr.bf16.mxu1 %v1349_v0  ;;  %1074 = vmatprep.subr.bf16.mxu0 %v1349_v0  ;;  %v1154_v5 = vpack.i.bf16 %v296_v3, %v295_v2  ;;  %v298_v6 = vld [vmem:[#allocation7 + $0x28] sm:$0xff]  ;;  %v293_v7 = vld [vmem:[#allocation7] sm:$0xff]  ;;  %s1352_s24 = smov 96   ;;  %vm304_vm1 = vcmask 130048  }
  0x7b   : > { %1051 = vmatprep.mubr.msk.f32.mxu1 %vm1350_vm0, %v1351_v1  ;;  %1040 = vmatprep.mubr.msk.f32.mxu0 %vm1350_vm0, %v1351_v1  ;;  %v294_v8 = vld [vmem:[#allocation7 + $0x8] sm:$0xff]  ;;  %v1159_v11 = vpack.i.bf16 %v298_v6, %v297_v4  ;;  %v301_v12 = vshrl.u32 %v300_v9, 7  ;;  %v299_v14 = vld [vmem:[%s1689_s4] sm:$0x3]  ;;  %v292_v27 = vld [vmem:[%s255_s17] sm:$0xff]  ;;  %vm398_vm2 = vcmask 261120  }
  0x7c   : > { %v1075_v10 = vpack.c.bf16 %v294_v8, %v293_v7  ;;  %1155 = vrot.lane.b32.xlu0 %v1154_v5, %s1352_s24  ;;  %v291_v13 = vld [vmem:[%s246_s6] sm:$0xff]  ;;  %s1353_s10 = smov 112   ;;  %vm634_vm3 = vcmask 64512   ;;  %s1354_s12 = smov 16  }
  0x7d   : > { %v302_v15 = vsub.s32 0, %v301_v12  ;;  %v838_v16 = vsub.s32 1, %v301_v12  ;;  %v1013_v37 = vld [vmem:[%s478_s3] ss:$0 sm:$0xff]  ;;  %s1355_s28 = smov 64   ;;  %s1017_s7 = sshll.u32 %s1408_s22, 7 }
  0x7e   : > { %1076 = vmatpush3.bf16.msra.mxu0 %v1075_v10  ;;  %s290_s23 = scalar_lea.vmem [#allocation8], %s1555_s16  ;;  %s1640_s14 = scalar_lea.hbm %s1690_s5, %s1017_s7 }
  0x7f   : > { %1054 = vmatprep.subr.mxu0 %v1351_v1  ;;  %v303_v17 = vrot.slane %v299_v14, %v302_v15  ;;  %v1586_v18 = vrot.slane %v299_v14, %v838_v16  ;;  %s891_s13 = sshll.u32 %s290_s23, 4  ;;  %s878_s17 = scalar_lea.sflag [#allocation4], %s1552_s8  ;;  %s1642_s13 = int_to_ptr.vmem [resolvable:$true] %s891_s13 }
  0x80   : > { %1160 = vrot.lane.b32.xlu0 %v1159_v11, %s1352_s24  ;;  %p1709_p13 = scmp.ne.s32.totalorder %s1703_s9, 0  ;;  %s1356_s22 = smov [#allocation8]  }
  0x81   : > { %1041 = vmatmul.mubr.msk.f32.vlgmr.msra.gmra.mrb[0].mxu0 %vm304_vm1, %v291_v13  ;;  %395 = vrot.lane.b32.xlu1 %v303_v17, %s1352_s24  ;;  %s1272_s16 = sshll.u32 %s1356_s22, 4  ;;  %s1273_s16 = int_to_ptr.vmem [resolvable:$false] %s1272_s16 }
  0x82   : > { %1056 = vmatprep.mubr.msk.f32.mxu0 %vm1350_vm0, %v1351_v1  ;;  %s1274_s27 = scalar_lea.vmem %s1273_s16, 256  ;;  %p1275_p9 = scmp.lt.s32.totalorder %s1642_s13, %s1273_s16 }
  0xee   : > { %v1156_v19 = vpop.permute.xlu0 %1155 }
  0xef   : > { %v1158_v20 = vunpack.i.h.bf16 %v1156_v19  ;;  %v1157_v21 = vunpack.i.l.bf16 %v1156_v19 }
  0xf1   : > { %v1078_v22 = vpack.c.bf16 %v1158_v20, %v1157_v21 }
  0xf2   : > { %v1161_v23 = vpop.permute.xlu0 %1160 }
  0xf3   : > { %v1163_v24 = vunpack.i.h.bf16 %v1161_v23  ;;  %v1162_v25 = vunpack.i.l.bf16 %v1161_v23  ;;  %1079 = vmatpush3.bf16.msra.mxu1 %v1078_v22  ;;  %v396_v31 = vpop.permute.xlu1 %395 }
  0xf4   : > { %1080 = vmatprep.subr.bf16.mxu1 %v1349_v0 }
  0xf5   : > { %v1081_v26 = vpack.c.bf16 %v1163_v24, %v1162_v25 }
  0xf7   : > { %1082 = vmatpush3.bf16.msra.mxu1 %v1081_v26 }
  0xf8   : > { %1064 = vmatprep.subr.mxu1 %v1351_v1 }
  0xfa   : > { %1052 = vmatmul.mubr.msk.f32.vlgmr.msra.gmra.mrb[0].mxu1 %vm398_vm2, %v292_v27 }
  0xfb   : > { %1066 = vmatprep.mubr.msk.f32.mxu1 %vm1350_vm0, %v1351_v1 }
 0x154   : > { %v374_v28 = vpop.f32.mrb[0].mxu0 }
 0x155   : > { %v375_v29 = vadd.f32 %v374_v28, %v303_v17  ;;  %v1042_v30 = vpop.f32.mrb[1].mxu0 }
 0x157   : > { %473 = vrot.lane.b32.xlu0 %v375_v29, %s1353_s10 }
 0x1c9   : > { %v474_v36 = vpop.permute.xlu0 %473 }
 0x1cd   : > { %v468_v32 = vpop.f32.mrb[0].mxu1 }
 0x1ce   : > { %v469_v33 = vadd.f32 %v468_v32, %v396_v31  ;;  %v1053_v34 = vpop.f32.mrb[1].mxu1 }
 0x1d0   : > { %476 = vrot.lane.b32.xlu1 %v469_v33, %s1353_s10  ;;  %1055 = vmatpush3.xpose.msk.msra.mxu0 %vm304_vm1, %v469_v33 }
 0x1d1   : > { %1059 = vmatprep.subr.mxu0 %v1351_v1 }
 0x1d3   : > { %1057 = vmatmul.mubr.msk.f32.vlgmr.msra.gmra.mrb[2].mxu0 %vm304_vm1, %v375_v29 }
 0x1d4   : > { %1061 = vmatprep.mubr.msk.f32.mxu0 %vm1350_vm0, %v1351_v1 }
 0x242   : > { %v477_v35 = vpop.permute.xlu1 %476 }
 0x243   : > { %1060 = vmatpush3.xpose.msk.msra.mxu0 %vm304_vm1, %v477_v35 }
 0x244   : > { %1069 = vmatprep.subr.mxu0 %v1351_v1 }
 0x246   : > { %1062 = vmatmul.mubr.msk.f32.vlgmr.msra.gmra.mrb[4].mxu0 %vm304_vm1, %v474_v36 }
 0x247   : > { %1071 = vmatprep.mubr.msk.f32.mxu0 %vm1350_vm0, %v1351_v1 }
 0x2a6   : > { %v550_v38 = vpop.f32.mrb[2].mxu0 }
 0x2a7   : > { %v632_v39 = vadd.f32 %v1013_v37, %v550_v38  ;;  %v1058_v40 = vpop.f32.mrb[3].mxu0 }
 0x2a9   : > { %v635_v41 = vsel %vm634_vm3, %v632_v39, -inf }
 0x2aa   : > { %636 = vmax.xlane.f32.xlu0 %v635_v41 }
 0x319   : > { %v624_v42 = vpop.f32.mrb[4].mxu0 }
 0x31a   : > { %v633_v43 = vadd.f32 %v1013_v37, %v624_v42  ;;  %v1063_v44 = vpop.f32.mrb[5].mxu0 }
 0x31c   : > { %v638_v45 = vsel %vm634_vm3, %v633_v43, -inf }
 0x31d   : > { %639 = vmax.xlane.f32.xlu1 %v638_v45 }
 0x32e   : > { %733 = vrot.lane.b32.xlu1 %v477_v35, %s1352_s24 }
 0x337   : > { %v637_v46 = vpop.xlane.xlu0 %636 }
 0x338   : > { %v641_v47 = vsub.f32 %v632_v39, %v637_v46 }
 0x33a   : > { %v643_v50 = vmul.f32 1.442695, %v641_v47 }
 0x3aa   : > { %v640_v48 = vpop.xlane.xlu1 %639 }
 0x3ab   : > { %v642_v49 = vsub.f32 %v633_v43, %v640_v48 }
 0x3ad   : > { %v645_v51 = vmul.f32 1.442695, %v642_v49 }
 0x3ae   : > { %v734_v52 = vpop.permute.xlu1 %733 }
 0x3af   : > { %1164 = vpow2.f32 %v645_v51  ;;  %1070 = vmatpush3.msra.mxu0 %v734_v52 }
 0x3b0   : > { %1166 = vpow2.f32 %v643_v50 }
 0x3b9   : > { %v1165_v53 = vpop.eup %1164 }
 0x3ba   : > { %v650_v54 = vsel %vm634_vm3, %v1165_v53, 0.0  ;;  %v1167_v55 = vpop.eup %1166 }
 0x3bb   : > { %651 = vadd.xlane.f32.xlu0 %v650_v54  ;;  %v647_v56 = vsel %vm634_vm3, %v1167_v55, 0.0 }
 0x3bf   : > { %648 = vadd.xlane.f32.xlu0 %v647_v56 }
 0x3d5   : > { %657 = vrot.lane.b32.xlu0 %v469_v33, %s1352_s24 }
 0x448   : > { %v652_v57 = vpop.xlane.xlu0 %651 }
 0x449   : > { %1168 = vrcp.f32 %v652_v57 }
 0x44c   : > { %v649_v58 = vpop.xlane.xlu0 %648 }
 0x44d   : > { %1170 = vrcp.f32 %v649_v58 }
 0x450   : > { %v658_v59 = vpop.permute.xlu0 %657 }
 0x451   : > { %1065 = vmatpush3.msra.mxu1 %v658_v59 }
 0x453   : > { %v1169_v60 = vpop.eup %1168 }
 0x454   : > { %v656_v61 = vmul.f32 %v1169_v60, %v1165_v53 }
 0x456   : > { %1072 = vmatmul.mubr.msk.f32.vlgmr.msra.gmra.mrb[6].mxu0 %vm634_vm3, %v656_v61 }
 0x457   : > { %v1171_v62 = vpop.eup %1170 }
 0x458   : > { %v655_v63 = vmul.f32 %v1171_v62, %v1167_v55 }
 0x45a   : > { %1067 = vmatmul.mubr.msk.f32.vlgmr.msra.gmra.mrb[2].mxu1 %vm634_vm3, %v655_v63 }
 0x529   : > { %v805_v0 = vpop.f32.mrb[6].mxu0 }
 0x52a   : > { %v1073_v1 = vpop.f32.mrb[7].mxu0  ;;  %v812_v2 = vsel %vm304_vm1, %v805_v0, 0.0 }
 0x52b   : > { %813 = vadd.xlane.f32.xlu1 %v812_v2 }
 0x52d   : > { %v729_v3 = vpop.f32.mrb[2].mxu1 }
 0x52e   : > { %v1068_v4 = vpop.f32.mrb[3].mxu1  ;;  %v809_v5 = vsel %vm304_vm1, %v729_v3, 0.0 }
 0x52f   : > { %810 = vadd.xlane.f32.xlu0 %v809_v5 }
 0x5b8   : > { %v814_v6 = vpop.xlane.xlu1 %813 }
 0x5b9   : > { %v817_v7 = vmul.f32 0.0625, %v814_v6 }
 0x5bb   : > { %v819_v8 = vsub.f32 %v805_v0, %v817_v7 }
 0x5bc   : > { %v811_v9 = vpop.xlane.xlu0 %810 }
 0x5bd   : > { %v816_v10 = vmul.f32 0.0625, %v811_v9  ;;  %v821_v11 = vmul.f32 %v819_v8, %v819_v8 }
 0x5bf   : > { %v818_v12 = vsub.f32 %v729_v3, %v816_v10  ;;  %v825_v13 = vsel %vm304_vm1, %v821_v11, 0.0 }
 0x5c0   : > { %826 = vadd.xlane.f32.xlu1 %v825_v13 }
 0x5c1   : > { %v820_v14 = vmul.f32 %v818_v12, %v818_v12 }
 0x5c3   : > { %v822_v15 = vsel %vm304_vm1, %v820_v14, 0.0 }
 0x5c4   : > { %823 = vadd.xlane.f32.xlu0 %v822_v15 }
 0x5d1   : > { %843 = vrot.lane.b32.xlu1 %v1586_v18, %s1353_s10 }
 0x64d   : > { %v827_v16 = vpop.xlane.xlu1 %826 }
 0x64e   : > { %v829_v17 = vmul.f32 0.0625, %v827_v16 }
 0x650   : > { %v831_v19 = vadd.f32 1e-05, %v829_v17 }
 0x651   : > { %v844_v22 = vpop.permute.xlu1 %843  ;;  %v824_v25 = vpop.xlane.xlu0 %823 }
 0x652   : > { %1172 = vrsqrt.f32 %v831_v19  ;;  %v828_v26 = vmul.f32 0.0625, %v824_v25 }
 0x654   : > { %v830_v27 = vadd.f32 1e-05, %v828_v26 }
 0x656   : > { %1174 = vrsqrt.f32 %v830_v27 }
 0x65c   : > { %v1173_v20 = vpop.eup %1172 }
 0x65d   : > { %v835_v21 = vmul.f32 %v1173_v20, %v819_v8 }
 0x65f   : > { %v841_v23 = vmul.f32 %v1586_v18, %v835_v21 }
 0x660   : > { %v1175_v28 = vpop.eup %1174 }
 0x661   : > { %v847_v24 = vadd.f32 %v844_v22, %v841_v23  ;;  %v834_v29 = vmul.f32 %v1175_v28, %v818_v12 }
 0x663   : > { %849 = vrot.lane.b32.xlu0 %v847_v24, %s1354_s12  ;;  %v840_v30 = vmul.f32 %v1586_v18, %v834_v29 }
 0x665   : > { %v846_v31 = vadd.f32 %v844_v22, %v840_v30 }
 0x6d5   : > { %v850_v32 = vpop.permute.xlu0 %849 }
 0x6d6   : > { %v852_v33 = vsel %vm304_vm1, %v846_v31, %v850_v32 }
 0x6d7   : > { %v853_v34 = vsel %vm398_vm2, %v852_v33, 0.0 }
 0x6d8   : > { %854 = vadd.xlane.f32.xlu1 %v853_v34 }
 0x6e9   : > { %867 = vrot.lane.b32.xlu1 %v1586_v18, %s1352_s24  ;;  %s1268_s24 = scalar_lea.vmem %s1642_s13, 128 }
 0x6ea   : > { %p1269_p10 = scmp.ne.s32.totalorder %s1642_s13, %s1268_s24  ;;  %p1276_p2 = scmp.lt.s32.totalorder %s1274_s27, %s1268_s24 }
 0x6ec   : > { %p1270_p3 = pnand %p1269_p10, %p1709_p13  ;;  %p1277_p5 = por %p1276_p2, %p1275_p9 }
 0x6ee   : > { %p1271_p7 = pneg %p1270_p3 }
 0x6f0   : > { %p1278_p1 = pnand %p1277_p5, %p1271_p7 }
 0x765   : > { %v855_v35 = vpop.xlane.xlu1 %854 }
 0x766   : > { %v857_v36 = vmul.f32 0.03125, %v855_v35 }
 0x768   : > { %v858_v37 = vsub.f32 %v852_v33, %v857_v36 }
 0x769   : > { %v868_v44 = vpop.permute.xlu1 %867 }
 0x76a   : > { %v859_v38 = vmul.f32 %v858_v37, %v858_v37 }
 0x76c   : > { %v860_v39 = vsel %vm398_vm2, %v859_v38, 0.0 }
 0x76d   : > { %861 = vadd.xlane.f32.xlu0 %v860_v39 }
 0x783   : > { %871 = vrot.lane.b32.xlu0 %v1586_v18, %s1355_s28 }
 0x7fa   : > { %v862_v40 = vpop.xlane.xlu0 %861 }
 0x7fb   : > { %v863_v41 = vmul.f32 0.03125, %v862_v40 }
 0x7fd   : > { %v864_v42 = vadd.f32 1e-05, %v863_v41 }
 0x7fe   : > { %v872_v46 = vpop.permute.xlu0 %871 }
 0x7ff   : > { %1176 = vrsqrt.f32 %v864_v42 }
 0x809   : > { %v1177_v43 = vpop.eup %1176 }
 0x80a   : > { %v866_v45 = vmul.f32 %v1177_v43, %v858_v37 }
 0x80c   : > { %v870_v47 = vmul.f32 %v868_v44, %v866_v45 }
 0x80e   : > { %v874_v48 = vadd.f32 %v872_v46, %v870_v47 }
 0x810   : > { %1178 = vtanh.f32 %v874_v48 }
 0x81a   : > { %v1179_v18 = vpop.eup %1178 }
 0x81b   : > { %876 = vst.msk [vmem:[%s290_s23] sm:$0xff] %vm398_vm2, %v1179_v18 }
 0x81c   : > { %1281 = shalt.err (!%p1278_p1)
}
 0x81d   : > { %s1282_s8 = scalar_lea.hbm %s1640_s14, 128  ;;  %s1286_s11 = scalar_lea.hbm %s1690_s5, 256 }
 0x81e   : > { %p1283_p6 = scmp.ne.s32.totalorder %s1640_s14, %s1282_s8  ;;  %p1287_p12 = scmp.lt.u32.totalorder %s1640_s14, %s1690_s5 }
 0x81f   : > { %p1288_p11 = scmp.lt.u32.totalorder %s1286_s11, %s1282_s8  ;;  %p1290_p10 = scmp.lt.u32.totalorder %s1282_s8, %s1640_s14 }
 0x820   : > { %p1284_p8 = pnand %p1283_p6, %p1709_p13 }
 0x821   : > { %p1289_p0 = por %p1288_p11, %p1287_p12 }
 0x822   : > { %p1285_p4 = pneg %p1284_p8 }
 0x823   : > { %p1291_p3 = por %p1290_p10, %p1289_p0 }
 0x825   : > { %p1292_p7 = pnand %p1291_p3, %p1285_p4 }
 0x827   : > { %1295 = shalt.err (!%p1292_p7)
}
 0x828   : > { %1091 = dma.vmem_to_hbm [thread:$0]  (%p1709_p13), %s1642_s13, 128, %s1640_s14, %s878_s17  }
 0x829 PF: > { %s903_s12 = sand.u32 1, %s1330_s18   ;;  %p1710_p9 = scmp.ne.s32.totalorder %s1697_s25, 0 }
 0x82a   : > { %p1711_p2 = scmp.ge.s32.totalorder %s1342_s21, 2  ;;  %s904_s28 = scalar_lea.sflag [#allocation4], %s903_s12 }
 0x82c   : > { %p1105_p5 = pnand %p1711_p2, %p1710_p9 }
 0x82e   : > { %1325 = dma.done.wait (!%p1105_p5), %s904_s28, 128  }
 0x82f   : > { %1327 = vsyncadd (!%p1105_p5), %s904_s28, 4294967168  ;;  %s1712_s7 = sld [smem:[#allocation13_spill]]  ;;  %p21_p1 = scmp.ge.s32.totalorder %s1443_s30, 4  }
 0x830   : > { %s1713_s18 = smov %s1334_s19  ;;  %s1714_s19 = smov %s1338_s20 }
 0x831   : > { %s1716_s21 = smov %s1443_s30  ;;  %23 = sbr.rel (!%p21_p1) target bundleno = 9 (0x9), region = 103 }
 0x835   : > { %s1715_s20 = smov %s1712_s7 }
 0x838   :  { %909 = vsyncpa [#allocation3], 1 }
 0x839   :  { %911 = vsyncpa [#allocation3 + $0x1], 1 }
 0x83a   :  { %912 = vsyncpa [#allocation6], 1 }
 0x83b   :  { %914 = vsyncpa [#allocation6 + $0x1], 1 }
 0x83c   :  { %915 = vsyncpa [#allocation4], 1 }
 0x83d   :  { %917 = vsyncpa [#allocation4 + $0x1], 1 }

</bundles_post_ra>
